<compile_context>
chip_gen: v7x
topology: tpu7x:2x2x1
jax: 0.10.0
libtpu: 0.0.40
codegen_flags: <defaults>
</compile_context>

<pallas_src>
import functools

import jax
import jax.numpy as jnp
from jax.experimental import pallas as pl
from jax.experimental.pallas import tpu as pltpu


def _round_up(x, m):
    return (x + m - 1) // m * m


def _subcon_loss_kernel(feat_q_ref, feat_k_ref, lab_q_ref, lab_k_ref, out_ref,
                        qn_sc, m_sc, l_sc, spos_sc, npos_sc,
                        *, inv_temp, n_valid, n_total, matmul_dtype):
    i = pl.program_id(0)            # query-row block
    k = pl.program_id(1)            # key-column block (reduction axis, last)
    tq = feat_q_ref.shape[0]
    tk = feat_k_ref.shape[0]

    # ---- per-row-block prologue: normalize q once, reset accumulators ------
    @pl.when(k == 0)
    def _():
        q = feat_q_ref[...].astype(jnp.float32)
        inv_n = jax.lax.rsqrt(
            jnp.maximum(jnp.sum(q * q, axis=1, keepdims=True), 1e-24))
        # fold 1/temp into the q operand so the matmul emits sim/temp directly
        qn_sc[...] = (q * (inv_n * inv_temp)).astype(matmul_dtype)
        m_sc[...] = jnp.full(m_sc.shape, -jnp.inf, dtype=m_sc.dtype)
        l_sc[...] = jnp.zeros(l_sc.shape, dtype=l_sc.dtype)
        spos_sc[...] = jnp.zeros(spos_sc.shape, dtype=spos_sc.dtype)
        npos_sc[...] = jnp.zeros(npos_sc.shape, dtype=npos_sc.dtype)

    # ---- normalize this k block, form the (tq, tk) score tile on the MXU ---
    kf = feat_k_ref[...].astype(jnp.float32)
    inv_nk = jax.lax.rsqrt(
        jnp.maximum(jnp.sum(kf * kf, axis=1, keepdims=True), 1e-24))
    kn = (kf * inv_nk).astype(matmul_dtype)

    s = jax.lax.dot_general(                       # NT form: q @ k^T, f32 acc
        qn_sc[...], kn,
        dimension_numbers=(((1,), (1,)), ((), ())),
        preferred_element_type=jnp.float32)        # (tq, tk) = sim / temp

    # ---- masks: never materialized as float arrays --------------------------
    row_g = jax.lax.broadcasted_iota(jnp.int32, (tq, tk), 0) + i * tq
    col_g = jax.lax.broadcasted_iota(jnp.int32, (tq, tk), 1) + k * tk
    denom_mask = row_g != col_g                    # exclude the diagonal
    if n_valid < n_total:                          # exclude padded columns
        denom_mask = denom_mask & (col_g < n_valid)
    pos = (lab_q_ref[...] == lab_k_ref[...]) & denom_mask   # (tq,1)==(1,tk)

    # ---- online log-sum-exp over the non-diagonal (valid) columns -----------
    # The max-shift constant cancels algebraically (as in the reference), so
    # including diagonal / padded columns in the running max is safe.
    m_prev = m_sc[...]
    m_new = jnp.maximum(m_prev, jnp.max(s, axis=1, keepdims=True))
    e = jnp.where(denom_mask, jnp.exp(s - m_new), 0.0)
    l_sc[...] = l_sc[...] * jnp.exp(m_prev - m_new) + jnp.sum(
        e, axis=1, keepdims=True)
    spos_sc[...] += jnp.sum(jnp.where(pos, s, 0.0), axis=1, keepdims=True)
    npos_sc[...] += jnp.sum(pos.astype(jnp.float32), axis=1, keepdims=True)
    m_sc[...] = m_new

    # ---- finalize: mean_log_prob_pos per row = sum(pos*logit)/npos - lse ----
    @pl.when(k == pl.num_programs(1) - 1)
    def _():
        lse = m_sc[...] + jnp.log(l_sc[...])
        # rows with no positives give 0/0 = NaN, matching the PyTorch module.
        out_ref[...] = spos_sc[...] / npos_sc[...] - lse


def subcon_loss(features, labels, temp=0.07, *, block=256,
                matmul_dtype=jnp.bfloat16):
    """features: (B, D) float, labels: (B,) int. Returns scalar f32 loss.

    block: tile size for the B x B similarity matrix (must be a multiple of
    128 when B > block; 256 is MXU-friendly on v6e/v7x, 128 on v5e).
    matmul_dtype: bf16 feeds the MXU at full rate (f32 accumulation); use
    jnp.float32 for bit-closer results.
    """
    B, D = features.shape

    # ---- tile sizing & padding (lane / sublane alignment) -------------------
    D_pad = _round_up(D, 128)
    if B <= block:
        T = _round_up(B, 8)          # one key block covers the whole batch
    else:
        if block % 128 != 0:
            raise ValueError("block must be a multiple of 128 when B > block")
        T = block
    B_pad = _round_up(B, T)

    f = features
    if (B_pad, D_pad) != (B, D):
        f = jnp.zeros((B_pad, D_pad), features.dtype).at[:B, :D].set(features)
    lab = labels.astype(jnp.int32).reshape(-1)
    if B_pad != B:
        # padded entries are excluded in-kernel via the column-validity mask
        lab = jnp.concatenate(
            [lab, jnp.full((B_pad - B,), -1, dtype=jnp.int32)])
    lab_col = lab.reshape(B_pad, 1)
    lab_row = lab.reshape(1, B_pad)

    n_blocks = B_pad // T

    kernel = functools.partial(
        _subcon_loss_kernel,
        inv_temp=float(1.0 / temp),
        n_valid=B, n_total=B_pad,
        matmul_dtype=matmul_dtype)

    grid_spec = pltpu.PrefetchScalarGridSpec(
        num_scalar_prefetch=0,
        grid=(n_blocks, n_blocks),
        in_specs=[
            pl.BlockSpec((T, D_pad), lambda i, k: (i, 0)),  # q rows (resident over k)
            pl.BlockSpec((T, D_pad), lambda i, k: (k, 0)),  # k rows (streamed)
            pl.BlockSpec((T, 1), lambda i, k: (i, 0)),      # labels, column form
            pl.BlockSpec((1, T), lambda i, k: (0, k)),      # labels, row form
        ],
        out_specs=pl.BlockSpec((T, 1), lambda i, k: (i, 0)),
        scratch_shapes=[
            pltpu.VMEM((T, D_pad), matmul_dtype),   # normalized, 1/temp-scaled q
            pltpu.VMEM((T, 1), jnp.float32),        # running row max
            pltpu.VMEM((T, 1), jnp.float32),        # running sum of exp
            pltpu.VMEM((T, 1), jnp.float32),        # sum(pos * logit)
            pltpu.VMEM((T, 1), jnp.float32),        # count of positives
        ],
    )

    itemsize = jnp.dtype(features.dtype).itemsize
    est = (2 * 2 * T * D_pad * itemsize                 # double-buffered q/k tiles
           + T * D_pad * jnp.dtype(matmul_dtype).itemsize   # qn scratch
           + 8 * T * T * 4                              # (T,T) tile intermediates
           + 32 * T * 4 + 8 * B_pad)                    # small scratch / labels / out
    vmem_limit = int(min(max(2 * est, 32 * 1024 * 1024), 64 * 1024 * 1024))

    mean_log_prob_pos = pl.pallas_call(
        kernel,
        out_shape=jax.ShapeDtypeStruct((B_pad, 1), jnp.float32),
        grid_spec=grid_spec,
        compiler_params=pltpu.CompilerParams(
            dimension_semantics=("parallel", "arbitrary"),
            vmem_limit_bytes=vmem_limit,
        ),
    )(f, f, lab_col, lab_row)

    return -jnp.mean(mean_log_prob_pos[:B, 0])


def _subcon_loss_ref(features, labels, temp=0.07):
    """Pure-JAX mirror of the PyTorch forward (f32 everywhere)."""
    f = features.astype(jnp.float32)
    B = f.shape[0]
    lab = labels.reshape(-1, 1)
    mask = (lab == lab.T).astype(jnp.float32)
    fn = f / jnp.maximum(jnp.linalg.norm(f, axis=1, keepdims=True), 1e-12)
    sim = fn @ fn.T / temp
    logits = sim - jnp.max(sim, axis=1, keepdims=True)
    logits_mask = 1.0 - jnp.eye(B, dtype=jnp.float32)
    mask = mask * logits_mask
    exp_logits = jnp.exp(logits) * logits_mask
    log_prob = logits - jnp.log(jnp.sum(exp_logits, axis=1, keepdims=True))
    mean_log_prob_pos = jnp.sum(mask * log_prob, axis=1) / jnp.sum(mask, axis=1)
    return -jnp.mean(mean_log_prob_pos)


def _subcon_loss_ref_bf16(features, labels, temp=0.07):
    """Mirror of the kernel's bf16-fed MXU path (same cast points)."""
    f = features.astype(jnp.float32)
    B = f.shape[0]
    fn = f * jax.lax.rsqrt(
        jnp.maximum(jnp.sum(f * f, axis=1, keepdims=True), 1e-24))
    q = (fn * (1.0 / temp)).astype(jnp.bfloat16)
    kk = fn.astype(jnp.bfloat16)
    sim = jax.lax.dot_general(q, kk, (((1,), (1,)), ((), ())),
                              preferred_element_type=jnp.float32)
    lab = labels.reshape(-1, 1)
    mask = (lab == lab.T).astype(jnp.float32)
    logits = sim - jnp.max(sim, axis=1, keepdims=True)
    logits_mask = 1.0 - jnp.eye(B, dtype=jnp.float32)
    mask = mask * logits_mask
    exp_logits = jnp.exp(logits) * logits_mask
    log_prob = logits - jnp.log(jnp.sum(exp_logits, axis=1, keepdims=True))
    mean_log_prob_pos = jnp.sum(mask * log_prob, axis=1) / jnp.sum(mask, axis=1)
    return -jnp.mean(mean_log_prob_pos)


if __name__ == "__main__":
    key = jax.random.PRNGKey(0)
    k1, k2, k3 = jax.random.split(key, 3)

    # --- case 1: tiny single-block path (B=8, D=32) --------------------------
    B, D = 8, 32
    feats = jax.random.normal(k1, (B, D), dtype=jnp.float32)
    labels = jnp.array([0, 1, 2, 3, 0, 1, 2, 3], dtype=jnp.int32)

    loss_f32 = jax.block_until_ready(
        subcon_loss(feats, labels, temp=0.07, matmul_dtype=jnp.float32))
    ref = _subcon_loss_ref(feats, labels, temp=0.07)
    assert jnp.isfinite(loss_f32), "loss is not finite"
    assert jnp.allclose(loss_f32, ref, atol=1e-4, rtol=1e-4), (loss_f32, ref)

    loss_bf16 = jax.block_until_ready(subcon_loss(feats, labels, temp=0.07))
    ref_bf16 = _subcon_loss_ref_bf16(feats, labels, temp=0.07)
    assert jnp.isfinite(loss_bf16), "bf16 loss is not finite"
    assert jnp.allclose(loss_bf16, ref_bf16, atol=5e-3, rtol=5e-3), (
        loss_bf16, ref_bf16)

    # --- case 2: batch/feature padding path (B=10 -> 16, D=48 -> 128) --------
    B, D = 10, 48
    feats = jax.random.normal(k2, (B, D), dtype=jnp.float32)
    labels = jnp.array([0, 1, 2, 3, 4, 0, 1, 2, 3, 4], dtype=jnp.int32)
    loss = jax.block_until_ready(
        subcon_loss(feats, labels, temp=0.07, matmul_dtype=jnp.float32))
    ref = _subcon_loss_ref(feats, labels, temp=0.07)
    assert jnp.isfinite(loss), "padded loss is not finite"
    assert jnp.allclose(loss, ref, atol=1e-4, rtol=1e-4), (loss, ref)

    # --- case 3: multi-block tiled path (grid 3x3, online LSE across k) ------
    B, D = 384, 32
    feats = jax.random.normal(k3, (B, D), dtype=jnp.float32)
    labels = jnp.arange(B, dtype=jnp.int32) % 12
    loss = jax.block_until_ready(subcon_loss(feats, labels, temp=0.07,
                                             block=128))
    ref = _subcon_loss_ref_bf16(feats, labels, temp=0.07)
    assert jnp.isfinite(loss), "tiled bf16 loss is not finite"
    assert jnp.allclose(loss, ref, atol=1e-2, rtol=1e-2), (loss, ref)

    print("KERNEL_OK")
</pallas_src>

<mosaic_0001>
module attributes {stable_mosaic.version = 11 : i64} {
  func.func @_subcon_loss_kernel(%arg0: i32, %arg1: i32, %arg2: memref<8x128xf32, #tpu.memory_space<vmem>>, %arg3: memref<8x128xf32, #tpu.memory_space<vmem>>, %arg4: memref<8x1xi32, #tpu.memory_space<vmem>>, %arg5: memref<1x8xi32, #tpu.memory_space<vmem>>, %arg6: memref<8x1xf32, #tpu.memory_space<vmem>>, %arg7: memref<8x128xf32, #tpu.memory_space<vmem>>, %arg8: memref<8x1xf32, #tpu.memory_space<vmem>>, %arg9: memref<8x1xf32, #tpu.memory_space<vmem>>, %arg10: memref<8x1xf32, #tpu.memory_space<vmem>>, %arg11: memref<8x1xf32, #tpu.memory_space<vmem>>) attributes {dimension_semantics = [#tpu.dimension_semantics<parallel>, #tpu.dimension_semantics<arbitrary>], iteration_bounds = array<i64: 1, 1>, scalar_prefetch = 0 : i64, scratch_operands = 5 : i64, tpu.core_type = #tpu.core_type<tc>, window_params = [{transform_indices = @transform_0, window_bounds = array<i64: 8, 128>}, {transform_indices = @transform_1, window_bounds = array<i64: 8, 128>}, {transform_indices = @transform_2, window_bounds = array<i64: 8, 1>}, {transform_indices = @transform_3, window_bounds = array<i64: 1, 8>}, {transform_indices = @transform_4, window_bounds = array<i64: 8, 1>}]} {
    %c0_i32 = arith.constant 0 : i32
    %0 = arith.cmpi eq, %arg1, %c0_i32 : i32
    %1 = arith.extui %0 : i1 to i32
    %c0_i32_0 = arith.constant 0 : i32
    %2 = arith.cmpi ne, %1, %c0_i32_0 : i32
    scf.if %2 {
      %c0_35 = arith.constant 0 : index
      %c0_36 = arith.constant 0 : index
      %64 = vector.load %arg2[%c0_35, %c0_36] : memref<8x128xf32, #tpu.memory_space<vmem>>, vector<8x128xf32>
      %65 = arith.mulf %64, %64 : vector<8x128xf32>
      %cst_37 = arith.constant dense<0.000000e+00> : vector<8xf32>
      %66 = vector.multi_reduction <add>, %65, %cst_37 [1] : vector<8x128xf32> to vector<8xf32>
      %67 = vector.shape_cast %66 : vector<8xf32> to vector<8x1xf32>
      %cst_38 = arith.constant 1.000000e-24 : f32
      %68 = vector.broadcast %cst_38 : f32 to vector<8x1xf32>
      %69 = arith.maximumf %67, %68 : vector<8x1xf32>
      %70 = math.rsqrt %69 : vector<8x1xf32>
      %cst_39 = arith.constant 14.2857141 : f32
      %71 = vector.broadcast %cst_39 : f32 to vector<8x1xf32>
      %72 = arith.mulf %70, %71 : vector<8x1xf32>
      %73 = vector.broadcast %72 : vector<8x1xf32> to vector<8x128xf32>
      %74 = arith.mulf %64, %73 : vector<8x128xf32>
      %c0_40 = arith.constant 0 : index
      %c0_41 = arith.constant 0 : index
      %75 = vector.load %arg7[%c0_40, %c0_41] : memref<8x128xf32, #tpu.memory_space<vmem>>, vector<8x128xf32>
      tpu.vector_store %arg7[%c0_40, %c0_41], %74 {strides = array<i32>} : memref<8x128xf32, #tpu.memory_space<vmem>>, vector<8x128xf32>,
      %cst_42 = arith.constant 0xFF800000 : f32
      %76 = vector.broadcast %cst_42 : f32 to vector<8x1xf32>
      %c0_43 = arith.constant 0 : index
      %c0_44 = arith.constant 0 : index
      %77 = vector.load %arg8[%c0_43, %c0_44] : memref<8x1xf32, #tpu.memory_space<vmem>>, vector<8x1xf32>
      tpu.vector_store %arg8[%c0_43, %c0_44], %76 {strides = array<i32>} : memref<8x1xf32, #tpu.memory_space<vmem>>, vector<8x1xf32>,
      %cst_45 = arith.constant 0.000000e+00 : f32
      %78 = vector.broadcast %cst_45 : f32 to vector<8x1xf32>
      %c0_46 = arith.constant 0 : index
      %c0_47 = arith.constant 0 : index
      %79 = vector.load %arg9[%c0_46, %c0_47] : memref<8x1xf32, #tpu.memory_space<vmem>>, vector<8x1xf32>
      tpu.vector_store %arg9[%c0_46, %c0_47], %78 {strides = array<i32>} : memref<8x1xf32, #tpu.memory_space<vmem>>, vector<8x1xf32>,
      %cst_48 = arith.constant 0.000000e+00 : f32
      %80 = vector.broadcast %cst_48 : f32 to vector<8x1xf32>
      %c0_49 = arith.constant 0 : index
      %c0_50 = arith.constant 0 : index
      %81 = vector.load %arg10[%c0_49, %c0_50] : memref<8x1xf32, #tpu.memory_space<vmem>>, vector<8x1xf32>
      tpu.vector_store %arg10[%c0_49, %c0_50], %80 {strides = array<i32>} : memref<8x1xf32, #tpu.memory_space<vmem>>, vector<8x1xf32>,
      %cst_51 = arith.constant 0.000000e+00 : f32
      %82 = vector.broadcast %cst_51 : f32 to vector<8x1xf32>
      %c0_52 = arith.constant 0 : index
      %c0_53 = arith.constant 0 : index
      %83 = vector.load %arg11[%c0_52, %c0_53] : memref<8x1xf32, #tpu.memory_space<vmem>>, vector<8x1xf32>
      tpu.vector_store %arg11[%c0_52, %c0_53], %82 {strides = array<i32>} : memref<8x1xf32, #tpu.memory_space<vmem>>, vector<8x1xf32>,
    } else {
    }
    %c0 = arith.constant 0 : index
    %c0_1 = arith.constant 0 : index
    %3 = vector.load %arg3[%c0, %c0_1] : memref<8x128xf32, #tpu.memory_space<vmem>>, vector<8x128xf32>
    %4 = arith.mulf %3, %3 : vector<8x128xf32>
    %cst = arith.constant dense<0.000000e+00> : vector<8xf32>
    %5 = vector.multi_reduction <add>, %4, %cst [1] : vector<8x128xf32> to vector<8xf32>
    %6 = vector.shape_cast %5 : vector<8xf32> to vector<8x1xf32>
    %cst_2 = arith.constant 1.000000e-24 : f32
    %7 = vector.broadcast %cst_2 : f32 to vector<8x1xf32>
    %8 = arith.maximumf %6, %7 : vector<8x1xf32>
    %9 = math.rsqrt %8 : vector<8x1xf32>
    %10 = vector.broadcast %9 : vector<8x1xf32> to vector<8x128xf32>
    %11 = arith.mulf %3, %10 : vector<8x128xf32>
    %c0_3 = arith.constant 0 : index
    %c0_4 = arith.constant 0 : index
    %12 = vector.load %arg7[%c0_3, %c0_4] : memref<8x128xf32, #tpu.memory_space<vmem>>, vector<8x128xf32>
    %cst_5 = arith.constant dense<0.000000e+00> : vector<8x8xf32>
    %13 = tpu.matmul %12, %11, %cst_5 {dimension_numbers = #tpu.dot_dimension_numbers<[1], [1], [0], [0], [0, 0, 1, 0], [], []>} : vector<8x128xf32>, vector<8x128xf32>, vector<8x8xf32> -> vector<8x8xf32>
    %14 = tpu.iota {dimensions = array<i32: 0>} : vector<8x8xi32>
    %c8_i32 = arith.constant 8 : i32
    %15 = arith.muli %arg0, %c8_i32 : i32
    %16 = vector.broadcast %15 : i32 to vector<8x8xi32>
    %17 = arith.addi %14, %16 : vector<8x8xi32>
    %18 = tpu.iota {dimensions = array<i32: 1>} : vector<8x8xi32>
    %c8_i32_6 = arith.constant 8 : i32
    %19 = arith.muli %arg1, %c8_i32_6 : i32
    %20 = vector.broadcast %19 : i32 to vector<8x8xi32>
    %21 = arith.addi %18, %20 : vector<8x8xi32>
    %22 = arith.cmpi ne, %17, %21 : vector<8x8xi32>
    %c0_7 = arith.constant 0 : index
    %c0_8 = arith.constant 0 : index
    %23 = vector.load %arg4[%c0_7, %c0_8] : memref<8x1xi32, #tpu.memory_space<vmem>>, vector<8x1xi32>
    %c0_9 = arith.constant 0 : index
    %c0_10 = arith.constant 0 : index
    %24 = vector.load %arg5[%c0_9, %c0_10] : memref<1x8xi32, #tpu.memory_space<vmem>>, vector<1x8xi32>
    %25 = vector.broadcast %23 : vector<8x1xi32> to vector<8x8xi32>
    %26 = vector.broadcast %24 : vector<1x8xi32> to vector<8x8xi32>
    %27 = arith.cmpi eq, %25, %26 : vector<8x8xi32>
    %28 = arith.andi %27, %22 : vector<8x8xi1>
    %c0_11 = arith.constant 0 : index
    %c0_12 = arith.constant 0 : index
    %29 = vector.load %arg8[%c0_11, %c0_12] : memref<8x1xf32, #tpu.memory_space<vmem>>, vector<8x1xf32>
    %cst_13 = arith.constant dense<0xFF800000> : vector<8xf32>
    %30 = vector.multi_reduction <maximumf>, %13, %cst_13 [1] : vector<8x8xf32> to vector<8xf32>
    %31 = vector.shape_cast %30 : vector<8xf32> to vector<8x1xf32>
    %32 = arith.maximumf %29, %31 : vector<8x1xf32>
    %33 = vector.broadcast %32 : vector<8x1xf32> to vector<8x8xf32>
    %34 = arith.subf %13, %33 : vector<8x8xf32>
    %35 = math.exp %34 : vector<8x8xf32>
    %cst_14 = arith.constant 0.000000e+00 : f32
    %36 = vector.broadcast %cst_14 : f32 to vector<8x8xf32>
    %37 = arith.select %22, %35, %36 : vector<8x8xi1>, vector<8x8xf32>
    %c0_15 = arith.constant 0 : index
    %c0_16 = arith.constant 0 : index
    %38 = vector.load %arg9[%c0_15, %c0_16] : memref<8x1xf32, #tpu.memory_space<vmem>>, vector<8x1xf32>
    %39 = arith.subf %29, %32 : vector<8x1xf32>
    %40 = math.exp %39 : vector<8x1xf32>
    %41 = arith.mulf %38, %40 : vector<8x1xf32>
    %cst_17 = arith.constant dense<0.000000e+00> : vector<8xf32>
    %42 = vector.multi_reduction <add>, %37, %cst_17 [1] : vector<8x8xf32> to vector<8xf32>
    %43 = vector.shape_cast %42 : vector<8xf32> to vector<8x1xf32>
    %44 = arith.addf %41, %43 : vector<8x1xf32>
    %c0_18 = arith.constant 0 : index
    %c0_19 = arith.constant 0 : index
    %45 = vector.load %arg9[%c0_18, %c0_19] : memref<8x1xf32, #tpu.memory_space<vmem>>, vector<8x1xf32>
    tpu.vector_store %arg9[%c0_18, %c0_19], %44 {strides = array<i32>} : memref<8x1xf32, #tpu.memory_space<vmem>>, vector<8x1xf32>,
    %c0_20 = arith.constant 0 : index
    %c0_21 = arith.constant 0 : index
    %46 = vector.load %arg10[%c0_20, %c0_21] : memref<8x1xf32, #tpu.memory_space<vmem>>, vector<8x1xf32>
    %cst_22 = arith.constant 0.000000e+00 : f32
    %47 = vector.broadcast %cst_22 : f32 to vector<8x8xf32>
    %48 = arith.select %28, %13, %47 : vector<8x8xi1>, vector<8x8xf32>
    %cst_23 = arith.constant dense<0.000000e+00> : vector<8xf32>
    %49 = vector.multi_reduction <add>, %48, %cst_23 [1] : vector<8x8xf32> to vector<8xf32>
    %50 = vector.shape_cast %49 : vector<8xf32> to vector<8x1xf32>
    %51 = arith.addf %46, %50 : vector<8x1xf32>
    %c0_24 = arith.constant 0 : index
    %c0_25 = arith.constant 0 : index
    %52 = vector.load %arg10[%c0_24, %c0_25] : memref<8x1xf32, #tpu.memory_space<vmem>>, vector<8x1xf32>
    tpu.vector_store %arg10[%c0_24, %c0_25], %51 {strides = array<i32>} : memref<8x1xf32, #tpu.memory_space<vmem>>, vector<8x1xf32>,
    %c0_26 = arith.constant 0 : index
    %c0_27 = arith.constant 0 : index
    %53 = vector.load %arg11[%c0_26, %c0_27] : memref<8x1xf32, #tpu.memory_space<vmem>>, vector<8x1xf32>
    %54 = arith.extui %28 : vector<8x8xi1> to vector<8x8xi32>
    %55 = arith.sitofp %54 : vector<8x8xi32> to vector<8x8xf32>
    %cst_28 = arith.constant dense<0.000000e+00> : vector<8xf32>
    %56 = vector.multi_reduction <add>, %55, %cst_28 [1] : vector<8x8xf32> to vector<8xf32>
    %57 = vector.shape_cast %56 : vector<8xf32> to vector<8x1xf32>
    %58 = arith.addf %53, %57 : vector<8x1xf32>
    %c0_29 = arith.constant 0 : index
    %c0_30 = arith.constant 0 : index
    %59 = vector.load %arg11[%c0_29, %c0_30] : memref<8x1xf32, #tpu.memory_space<vmem>>, vector<8x1xf32>
    tpu.vector_store %arg11[%c0_29, %c0_30], %58 {strides = array<i32>} : memref<8x1xf32, #tpu.memory_space<vmem>>, vector<8x1xf32>,
    %c0_31 = arith.constant 0 : index
    %c0_32 = arith.constant 0 : index
    %60 = vector.load %arg8[%c0_31, %c0_32] : memref<8x1xf32, #tpu.memory_space<vmem>>, vector<8x1xf32>
    tpu.vector_store %arg8[%c0_31, %c0_32], %32 {strides = array<i32>} : memref<8x1xf32, #tpu.memory_space<vmem>>, vector<8x1xf32>,
    %c0_i32_33 = arith.constant 0 : i32
    %61 = arith.cmpi eq, %arg1, %c0_i32_33 : i32
    %62 = arith.extui %61 : i1 to i32
    %c0_i32_34 = arith.constant 0 : i32
    %63 = arith.cmpi ne, %62, %c0_i32_34 : i32
    scf.if %63 {
      %c0_35 = arith.constant 0 : index
      %c0_36 = arith.constant 0 : index
      %64 = vector.load %arg8[%c0_35, %c0_36] : memref<8x1xf32, #tpu.memory_space<vmem>>, vector<8x1xf32>
      %c0_37 = arith.constant 0 : index
      %c0_38 = arith.constant 0 : index
      %65 = vector.load %arg9[%c0_37, %c0_38] : memref<8x1xf32, #tpu.memory_space<vmem>>, vector<8x1xf32>
      %66 = math.log %65 : vector<8x1xf32>
      %67 = arith.addf %64, %66 : vector<8x1xf32>
      %c0_39 = arith.constant 0 : index
      %c0_40 = arith.constant 0 : index
      %68 = vector.load %arg10[%c0_39, %c0_40] : memref<8x1xf32, #tpu.memory_space<vmem>>, vector<8x1xf32>
      %c0_41 = arith.constant 0 : index
      %c0_42 = arith.constant 0 : index
      %69 = vector.load %arg11[%c0_41, %c0_42] : memref<8x1xf32, #tpu.memory_space<vmem>>, vector<8x1xf32>
      %70 = arith.divf %68, %69 : vector<8x1xf32>
      %71 = arith.subf %70, %67 : vector<8x1xf32>
      %c0_43 = arith.constant 0 : index
      %c0_44 = arith.constant 0 : index
      %72 = vector.load %arg6[%c0_43, %c0_44] : memref<8x1xf32, #tpu.memory_space<vmem>>, vector<8x1xf32>
      tpu.vector_store %arg6[%c0_43, %c0_44], %71 {strides = array<i32>} : memref<8x1xf32, #tpu.memory_space<vmem>>, vector<8x1xf32>,
    } else {
    }
    return
  }
  func.func @transform_0(%arg0: i32, %arg1: i32) -> (i32, i32) {
    %c0_i32 = arith.constant 0 : i32
    %c0_i32_0 = arith.constant 0 : i32
    return %arg0, %c0_i32 : i32, i32
  }
  func.func @transform_1(%arg0: i32, %arg1: i32) -> (i32, i32) {
    %c0_i32 = arith.constant 0 : i32
    %c0_i32_0 = arith.constant 0 : i32
    return %arg1, %c0_i32 : i32, i32
  }
  func.func @transform_2(%arg0: i32, %arg1: i32) -> (i32, i32) {
    %c0_i32 = arith.constant 0 : i32
    %c0_i32_0 = arith.constant 0 : i32
    return %arg0, %c0_i32 : i32, i32
  }
  func.func @transform_3(%arg0: i32, %arg1: i32) -> (i32, i32) {
    %c0_i32 = arith.constant 0 : i32
    %c0_i32_0 = arith.constant 0 : i32
    return %c0_i32, %arg1 : i32, i32
  }
  func.func @transform_4(%arg0: i32, %arg1: i32) -> (i32, i32) {
    %c0_i32 = arith.constant 0 : i32
    %c0_i32_0 = arith.constant 0 : i32
    return %arg0, %c0_i32 : i32, i32
  }
}

</mosaic_0001>

<bundles_post_ra>
// kernel: tpu_custom_call.1
= control target key start
LH: loop header
LB: loop body
LE: loop exit
PB: predicated region body
PF: predicated region fallthrough
CT: control target
= control target key end

     0   :  { %9 = vsyncpa [#allocation8], 0  ;;  %s260_s15 = smov [#allocation7]   ;;  %s335_s0 = inlined_call_operand.vmem [shape: f32[8,128], index: 0, kind: input, shape index: {}]   ;;  %s336_s1 = inlined_call_operand.hbm [shape: f32[8,128], index: 1, kind: input, shape index: {}]   ;;  %s337_s2 = inlined_call_operand.vmem [shape: s32[8,1], index: 2, kind: input, shape index: {}]   ;;  %s338_s3 = inlined_call_operand.vmem [shape: s32[1,8], index: 3, kind: input, shape index: {}]   ;;  %s339_s4 = inlined_call_operand.vmem [shape: f32[8,1], index: 4, kind: output, shape index: {}]  }
   0x1   :  { %s18_s16 = sshll.u32 %s260_s15, 4  ;;  %s236_s19 = scalar_lea.hbm %s336_s1, 128  ;;  %s19_s16 = int_to_ptr.vmem [resolvable:$true] %s18_s16 }
   0x2   :  { %p237_p0 = scmp.ne.s32.totalorder %s336_s1, %s236_s19  ;;  %p240_p1 = scmp.lt.u32.totalorder %s236_s19, %s336_s1 }
   0x4   :  { %p242_p2 = pnand %p240_p1, %p237_p0 }
   0x6   :  { %245 = shalt.err (!%p242_p2)
}
   0x7   :  { %s246_s24 = scalar_lea.vmem %s19_s16, 128  ;;  %p251_p4 = scmp.lt.s32.totalorder %s19_s16, %s19_s16 }
   0x8   :  { %p247_p3 = scmp.ne.s32.totalorder %s19_s16, %s246_s24  ;;  %p252_p5 = scmp.lt.s32.totalorder %s246_s24, %s246_s24 }
   0xa   :  { %p253_p6 = por %p252_p5, %p251_p4 }
   0xc   :  { %p254_p7 = pnand %p253_p6, %p247_p3 }
   0xe   :  { %257 = shalt.err (!%p254_p7)
}
   0xf   :  { %21 = dma.hbm_to_vmem [thread:$0]  %s336_s1, 128, %s19_s16, [#allocation8]  }
  0x10   :  { %258 = dma.done.wait [#allocation8], 128  }
  0x11   :  { %259 = vsyncadd [#allocation8], 4294967168  ;;  %v47_v0 = vld [vmem:[#allocation7] sm:$0xff]  ;;  %v261_v4 = vmov 0.0   ;;  %vm262_vm0 = vmmov 0   ;;  %v263_v6 = vmov 0   ;;  %v125_v20 = vlaneseq }
  0x12   :  { %v33_v1 = vld [vmem:[%s335_s0] sm:$0xff]  ;;  %v48_v2 = vmul.f32 %v47_v0, %v47_v0  ;;  %212 = vmatprep.subr.mxu0 %v261_v4  ;;  %214 = vmatprep.mubr.msk.f32.mxu0 %vm262_vm0, %v261_v4  ;;  %vm42_vm1 = vcmask 7168   ;;  %v264_v16 = vmov -inf   ;;  %vm148_vm2 = vcmask 64512  }
  0x13   :  { %v34_v3 = vmul.f32 %v33_v1, %v33_v1  ;;  %v136_v5 = vld [vmem:[%s337_s2] sm:$0xff]  ;;  %223 = vset.pattern.permute.xlu0 %v263_v6  ;;  %222 = vset.pattern.permute.xlu1 %v263_v6  ;;  %43 = vst.msk [vmem:[#allocation3] sm:$0xff] %vm42_vm1, %v264_v16  ;;  %44 = vst.msk [vmem:[#allocation4] sm:$0xff] %vm42_vm1, %v261_v4  ;;  %v126_v22 = vshrl.u32 %v125_v20, 7  ;;  %v131_v23 = vand.u32 127, %v125_v20 }
  0x14   :  { %49 = vadd.xlane.f32.xlu0 %v48_v2  ;;  %45 = vst.msk [vmem:[#allocation5] sm:$0xff] %vm42_vm1, %v261_v4  ;;  %46 = vst.msk [vmem:[#allocation6] sm:$0xff] %vm42_vm1, %v261_v4  ;;  %v208_v24 = vld [vmem:[%s338_s3] ss:$0 sm:$0xff] }
  0x15   :  { %vm135_vm3 = vcmp.ne.s32.totalorder %v126_v22, %v131_v23 }
  0x18   :  { %35 = vadd.xlane.f32.xlu0 %v34_v3 }
  0x1a   :  { %v147_v21 = vld [vmem:[#allocation3] sm:$0xff]  ;;  %v162_v45 = vld [vmem:[#allocation4] sm:$0xff] }
  0x1b   :  { %v180_v39 = vld [vmem:[#allocation6] sm:$0xff]  ;;  %v173_v49 = vld [vmem:[#allocation5] sm:$0xff] }
  0x2e   :  { %139 = vperm.xlu0 %223, %v136_v5  }
  0xa1   :  { %v50_v7 = vpop.xlane.xlu0 %49 }
  0xa2   :  { %v51_v8 = vmax.f32 %v50_v7, 1e-24 }
  0xa4   :  { %224 = vrsqrt.f32 %v51_v8 }
  0xa5   :  { %v36_v9 = vpop.xlane.xlu0 %35 }
  0xa6   :  { %v37_v10 = vmax.f32 %v36_v9, 1e-24 }
  0xa8   :  { %226 = vrsqrt.f32 %v37_v10 }
  0xad   :  { %v140_v25 = vpop.permute.xlu0 %139 }
  0xae   :  { %v225_v11 = vpop.eup %224  ;;  %vm145_vm4 = vcmp.eq.s32.totalorder %v140_v25, %v208_v24 }
  0xaf   :  { %v53_v12 = vmul.f32 %v225_v11, %v47_v0  ;;  %vm317_vm5 = vmand %vm145_vm4, %vm135_vm3 }
  0xb0   :  { %v209_v30 = vsel %vm317_vm5, 1.0, %v261_v4 }
  0xb1   :  { %213 = vmatpush3.xpose.msra.mxu0 %v53_v12  ;;  %v183_v31 = vsel %vm148_vm2, %v209_v30, 0.0 }
  0xb2   :  { %v227_v13 = vpop.eup %226  ;;  %184 = vadd.xlane.f32.xlu0 %v183_v31 }
  0xb3   :  { %v39_v14 = vmul.f32 14.285714, %v227_v13 }
  0xb5   :  { %v40_v15 = vmul.f32 %v39_v14, %v33_v1 }
  0xb7   :  { %215 = vmatmul.mubr.f32.vlgmr.msra.gmra.mrb[0].mxu0 %v40_v15 }
 0x13f   :  { %v185_v40 = vpop.xlane.xlu0 %184 }
 0x140   :  { %v186_v42 = vadd.f32 %v185_v40, %v180_v39 }
 0x142   :  { %187 = vst.msk [vmem:[#allocation6] sm:$0xff] %vm42_vm1, %v186_v42 }
 0x149   :  { %v198_v52 = vld [vmem:[#allocation6] sm:$0xff] }
 0x18a   :  { %v121_v17 = vpop.f32.mrb[0].mxu0 }
 0x18b   :  { %v216_v18 = vpop.f32.mrb[1].mxu0  ;;  %v149_v19 = vsel %vm148_vm2, %v121_v17, -inf  ;;  %v174_v38 = vsel %vm317_vm5, %v121_v17, 0.0 }
 0x18c   :  { %150 = vmax.xlane.f32.xlu1 %v149_v19  ;;  %v175_v41 = vsel %vm148_vm2, %v174_v38, 0.0 }
 0x219   :  { %v151_v26 = vpop.xlane.xlu1 %150 }
 0x21a   :  { %v152_v27 = vmax.f32 %v147_v21, %v151_v26 }
 0x21c   :  { %v163_v28 = vsub.f32 %v147_v21, %v152_v27  ;;  %188 = vst.msk [vmem:[#allocation3] sm:$0xff] %vm42_vm1, %v152_v27  ;;  %155 = vperm.xlu1 %222, %v152_v27  }
 0x21e   :  { %v164_v43 = vmul.f32 1.442695, %v163_v28 }
 0x223   :  { %v192_v58 = vld [vmem:[#allocation3] sm:$0xff] }
 0x29b   :  { %v156_v32 = vpop.permute.xlu1 %155 }
 0x29c   :  { %v158_v33 = vsub.f32 %v121_v17, %v156_v32 }
 0x29e   :  { %v159_v34 = vmul.f32 1.442695, %v158_v33 }
 0x2a0   :  { %228 = vpow2.f32 %v159_v34 }
 0x2a1   :  { %230 = vpow2.f32 %v164_v43 }
 0x2a2   :  { %232 = vrcp.f32 %v198_v52 }
 0x2aa   :  { %v229_v35 = vpop.eup %228 }
 0x2ab   :  { %v161_v36 = vsel %vm135_vm3, %v229_v35, 0.0  ;;  %v231_v44 = vpop.eup %230 }
 0x2ac   :  { %v167_v37 = vsel %vm148_vm2, %v161_v36, 0.0  ;;  %v166_v46 = vmul.f32 %v231_v44, %v162_v45  ;;  %v233_v54 = vpop.eup %232 }
 0x2ad   :  { %168 = vadd.xlane.f32.xlu1 %v167_v37 }
 0x2b1   :  { %176 = vadd.xlane.f32.xlu1 %v175_v41 }
 0x33a   :  { %v169_v47 = vpop.xlane.xlu1 %168 }
 0x33b   :  { %v170_v48 = vadd.f32 %v169_v47, %v166_v46 }
 0x33d   :  { %172 = vst.msk [vmem:[#allocation4] sm:$0xff] %vm42_vm1, %v170_v48 }
 0x33e   :  { %v177_v50 = vpop.xlane.xlu1 %176 }
 0x33f   :  { %v178_v51 = vadd.f32 %v177_v50, %v173_v49 }
 0x341   :  { %179 = vst.msk [vmem:[#allocation5] sm:$0xff] %vm42_vm1, %v178_v51 }
 0x344   :  { %v193_v53 = vld [vmem:[#allocation4] sm:$0xff] }
 0x345   :  { %234 = vlog2.f32 %v193_v53 }
 0x348   :  { %v197_v56 = vld [vmem:[#allocation5] sm:$0xff] }
 0x349   :  { %v200_v60 = vmul.f32 %v233_v54, %v197_v56 }
 0x34f   :  { %v235_v55 = vpop.eup %234 }
 0x350   :  { %v195_v57 = vmul.f32 0.6931472, %v235_v55 }
 0x352   :  { %v196_v59 = vadd.f32 %v195_v57, %v192_v58 }
 0x354   :  { %v201_v61 = vsub.f32 %v200_v60, %v196_v59 }
 0x356   :  { %202 = vst.msk [vmem:[%s339_s4] sm:$0xff] %vm42_vm1, %v201_v61 }
 0x357   :  { %207 = vsyncpa [#allocation8], 1 }

</bundles_post_ra>
